<compile_context>
chip_gen: v7x
topology: tpu7x:2x2x1
jax: 0.10.0
libtpu: 0.0.40
codegen_flags: <defaults>
</compile_context>

<pallas_src>
import jax
import jax.numpy as jnp
from jax import lax
from jax.experimental import pallas as pl
from jax.experimental.pallas import tpu as pltpu


def mlp_kernel(x_ref,
               w1_ref, b1_ref, w2_ref, b2_ref, w3_ref, b3_ref,
               w4_ref, b4_ref, w5_ref, b5_ref, w6_ref, b6_ref,
               w7_ref, b7_ref,
               o_ref):
    # Batch-major activations: (TILE_B, features), bf16 into the MXU.
    # Weights arrive pre-transposed (in, out) bf16; biases are (1, out) f32.
    h = x_ref[...]                                          # (TILE_B, 28) bf16

    def linear_relu(h, w_ref, b_ref):
        z = jnp.dot(h, w_ref[...],
                    preferred_element_type=jnp.float32)     # f32 accumulator
        z = z + b_ref[...]                                   # f32 bias add
        return jnp.maximum(z, 0.0).astype(jnp.bfloat16)      # ReLU, back to bf16

    h = linear_relu(h, w1_ref, b1_ref)   # (TILE_B, 32)
    h = linear_relu(h, w2_ref, b2_ref)   # (TILE_B, 64)
    h = linear_relu(h, w3_ref, b3_ref)   # (TILE_B, 128)
    h = linear_relu(h, w4_ref, b4_ref)   # (TILE_B, 256)
    h = linear_relu(h, w5_ref, b5_ref)   # (TILE_B, 512)
    h = linear_relu(h, w6_ref, b6_ref)   # (TILE_B, 64)

    # Layer 7 + sigmoid. w7 stays (1, 64); contract feature dims of both
    # operands so the result is already the lane-dense (1, TILE_B) slab.
    z = lax.dot_general(w7_ref[...], h,
                        dimension_numbers=(((1,), (1,)), ((), ())),
                        preferred_element_type=jnp.float32)  # (1, TILE_B)
    z = z + b7_ref[...]                                       # b7 is (1, 1)
    o_ref[...] = jax.nn.sigmoid(z).astype(o_ref.dtype)


def _choose_tile_b(B, max_tile_b=1024, min_tiles=4):
    """Batch tile: single sublane-aligned tile for small B (cheap ragged tail),
    otherwise >= min_tiles MXU-aligned tiles so v7x's two TensorCores both get
    work, capped at max_tile_b to keep the pipeline flowing."""
    if B <= 256:
        return max(8, -(-B // 8) * 8)
    tile = -(-B // min_tiles)
    tile = -(-tile // 256) * 256
    return int(max(256, min(tile, max_tile_b)))


def model6_forward(x, params, max_tile_b=1024):
    """x: (B, 28) float32. params: list of (W, b) with W (out, in), b (out,)."""
    B, F = x.shape
    tile_b = _choose_tile_b(B, max_tile_b)
    num_tiles = pl.cdiv(B, tile_b)
    b_pad = num_tiles * tile_b

    # Cast once to bf16 (halves the x HBM->VMEM DMA) and zero-pad the ragged tail.
    xb = x.astype(jnp.bfloat16)
    if b_pad != B:
        xb = jnp.pad(xb, ((0, b_pad - B), (0, 0)))

    flat = [xb]
    in_specs = [pl.BlockSpec((tile_b, F), lambda i: (i, 0))]
    n_layers = len(params)
    for li, (w, b) in enumerate(params):
        if li == n_layers - 1:
            wk = w.astype(jnp.bfloat16)                 # keep (1, 64) for dot_general
        else:
            wk = w.T.astype(jnp.bfloat16)               # (in, out) weight-stationary
        bk = b.reshape(1, -1).astype(jnp.float32)       # (1, out) f32 bias row
        flat += [wk, bk]
        # Constant index_map -> VMEM-resident across all grid steps.
        in_specs += [pl.BlockSpec(wk.shape, lambda i: (0, 0)),
                     pl.BlockSpec(bk.shape, lambda i: (0, 0))]

    out = pl.pallas_call(
        mlp_kernel,
        out_shape=jax.ShapeDtypeStruct((1, b_pad), jnp.float32),
        grid=(num_tiles,),
        in_specs=in_specs,
        out_specs=pl.BlockSpec((1, tile_b), lambda i: (0, i)),
        compiler_params=pltpu.CompilerParams(
            dimension_semantics=("parallel",),
            vmem_limit_bytes=32 << 20),
    )(*flat)

    # Lane-dense (1, B_pad) slab -> (B, 1) like the PyTorch module.
    return out[0, :B].reshape(B, 1)


def init_params(key):
    """nn.Linear-style init; W stored (out, in), b stored (out,)."""
    dims = [28, 32, 64, 128, 256, 512, 64, 1]
    params = []
    for i in range(len(dims) - 1):
        fan_in, fan_out = dims[i], dims[i + 1]
        key, kw, kb = jax.random.split(key, 3)
        bound = 1.0 / jnp.sqrt(fan_in)
        w = jax.random.uniform(kw, (fan_out, fan_in), jnp.float32, -bound, bound)
        b = jax.random.uniform(kb, (fan_out,), jnp.float32, -bound, bound)
        params.append((w, b))
    return params


def ref_forward_f32(x, params):
    """Exact-math reference (module semantics, HIGHEST precision)."""
    h = x
    for i, (w, b) in enumerate(params):
        h = jnp.dot(h, w.T, precision=lax.Precision.HIGHEST) + b[None, :]
        h = jnp.maximum(h, 0.0) if i < len(params) - 1 else jax.nn.sigmoid(h)
    return h


def ref_forward_bf16(x, params):
    """Reference mirroring the kernel's bf16-matmul / f32-accumulate numerics."""
    h = x.astype(jnp.bfloat16)
    for i, (w, b) in enumerate(params):
        z = jnp.dot(h.astype(jnp.bfloat16), w.T.astype(jnp.bfloat16),
                    preferred_element_type=jnp.float32) + b[None, :]
        if i < len(params) - 1:
            h = jnp.maximum(z, 0.0).astype(jnp.bfloat16)
        else:
            h = jax.nn.sigmoid(z)
    return h


if __name__ == "__main__":
    key = jax.random.PRNGKey(0)
    key, kx = jax.random.split(key)

    B = 8
    x = jax.random.normal(kx, (B, 28), dtype=jnp.float32)
    params = init_params(key)

    out = jax.block_until_ready(model6_forward(x, params))
    assert out.shape == (B, 1), out.shape

    # Tight check vs. a reference with matching bf16/f32 numerics.
    ref_bf = ref_forward_bf16(x, params)
    assert jnp.allclose(out, ref_bf, atol=2e-3, rtol=2e-3), "mismatch vs bf16 reference"

    # Loose check vs. the exact-math (PyTorch-semantics) reference.
    ref_hi = ref_forward_f32(x, params)
    assert jnp.allclose(out, ref_hi, atol=3e-2, rtol=3e-2), "mismatch vs f32 reference"

    print("KERNEL_OK")
</pallas_src>

<mosaic_0001>
module attributes {stable_mosaic.version = 11 : i64} {
  func.func @mlp_kernel(%arg0: i32, %arg1: memref<8x28xbf16, #tpu.memory_space<vmem>>, %arg2: memref<28x32xbf16, #tpu.memory_space<vmem>>, %arg3: memref<1x32xf32, #tpu.memory_space<vmem>>, %arg4: memref<32x64xbf16, #tpu.memory_space<vmem>>, %arg5: memref<1x64xf32, #tpu.memory_space<vmem>>, %arg6: memref<64x128xbf16, #tpu.memory_space<vmem>>, %arg7: memref<1x128xf32, #tpu.memory_space<vmem>>, %arg8: memref<128x256xbf16, #tpu.memory_space<vmem>>, %arg9: memref<1x256xf32, #tpu.memory_space<vmem>>, %arg10: memref<256x512xbf16, #tpu.memory_space<vmem>>, %arg11: memref<1x512xf32, #tpu.memory_space<vmem>>, %arg12: memref<512x64xbf16, #tpu.memory_space<vmem>>, %arg13: memref<1x64xf32, #tpu.memory_space<vmem>>, %arg14: memref<1x64xbf16, #tpu.memory_space<vmem>>, %arg15: memref<1x1xf32, #tpu.memory_space<vmem>>, %arg16: memref<1x8xf32, #tpu.memory_space<vmem>>) attributes {dimension_semantics = [#tpu.dimension_semantics<parallel>], iteration_bounds = array<i64: 1>, scalar_prefetch = 0 : i64, scratch_operands = 0 : i64, tpu.core_type = #tpu.core_type<tc>, window_params = [{transform_indices = @transform_0, window_bounds = array<i64: 8, 28>}, {pipeline_mode = #tpu.pipeline_mode<synchronous>, transform_indices = @transform_1, window_bounds = array<i64: 28, 32>}, {pipeline_mode = #tpu.pipeline_mode<synchronous>, transform_indices = @transform_2, window_bounds = array<i64: 1, 32>}, {pipeline_mode = #tpu.pipeline_mode<synchronous>, transform_indices = @transform_3, window_bounds = array<i64: 32, 64>}, {pipeline_mode = #tpu.pipeline_mode<synchronous>, transform_indices = @transform_4, window_bounds = array<i64: 1, 64>}, {pipeline_mode = #tpu.pipeline_mode<synchronous>, transform_indices = @transform_5, window_bounds = array<i64: 64, 128>}, {pipeline_mode = #tpu.pipeline_mode<synchronous>, transform_indices = @transform_6, window_bounds = array<i64: 1, 128>}, {pipeline_mode = #tpu.pipeline_mode<synchronous>, transform_indices = @transform_7, window_bounds = array<i64: 128, 256>}, {pipeline_mode = #tpu.pipeline_mode<synchronous>, transform_indices = @transform_8, window_bounds = array<i64: 1, 256>}, {pipeline_mode = #tpu.pipeline_mode<synchronous>, transform_indices = @transform_9, window_bounds = array<i64: 256, 512>}, {pipeline_mode = #tpu.pipeline_mode<synchronous>, transform_indices = @transform_10, window_bounds = array<i64: 1, 512>}, {pipeline_mode = #tpu.pipeline_mode<synchronous>, transform_indices = @transform_11, window_bounds = array<i64: 512, 64>}, {pipeline_mode = #tpu.pipeline_mode<synchronous>, transform_indices = @transform_12, window_bounds = array<i64: 1, 64>}, {pipeline_mode = #tpu.pipeline_mode<synchronous>, transform_indices = @transform_13, window_bounds = array<i64: 1, 64>}, {pipeline_mode = #tpu.pipeline_mode<synchronous>, transform_indices = @transform_14, window_bounds = array<i64: 1, 1>}, {transform_indices = @transform_15, window_bounds = array<i64: 1, 8>}]} {
    %c0 = arith.constant 0 : index
    %c0_0 = arith.constant 0 : index
    %0 = vector.load %arg1[%c0, %c0_0] : memref<8x28xbf16, #tpu.memory_space<vmem>>, vector<8x28xbf16>
    %c0_1 = arith.constant 0 : index
    %c0_2 = arith.constant 0 : index
    %1 = vector.load %arg2[%c0_1, %c0_2] : memref<28x32xbf16, #tpu.memory_space<vmem>>, vector<28x32xbf16>
    %cst = arith.constant dense<0.000000e+00> : vector<8x32xf32>
    %2 = tpu.matmul %0, %1, %cst {dimension_numbers = #tpu.dot_dimension_numbers<[1], [0], [0], [1], [0, 0, 1, 1], [], []>} : vector<8x28xbf16>, vector<28x32xbf16>, vector<8x32xf32> -> vector<8x32xf32>
    %c0_3 = arith.constant 0 : index
    %c0_4 = arith.constant 0 : index
    %3 = vector.load %arg3[%c0_3, %c0_4] : memref<1x32xf32, #tpu.memory_space<vmem>>, vector<1x32xf32>
    %4 = vector.broadcast %3 : vector<1x32xf32> to vector<8x32xf32>
    %5 = arith.addf %2, %4 : vector<8x32xf32>
    %cst_5 = arith.constant 0.000000e+00 : f32
    %6 = vector.broadcast %cst_5 : f32 to vector<8x32xf32>
    %7 = arith.maximumf %5, %6 : vector<8x32xf32>
    %8 = arith.truncf %7 : vector<8x32xf32> to vector<8x32xbf16>
    %c0_6 = arith.constant 0 : index
    %c0_7 = arith.constant 0 : index
    %9 = vector.load %arg4[%c0_6, %c0_7] : memref<32x64xbf16, #tpu.memory_space<vmem>>, vector<32x64xbf16>
    %cst_8 = arith.constant dense<0.000000e+00> : vector<8x64xf32>
    %10 = tpu.matmul %8, %9, %cst_8 {dimension_numbers = #tpu.dot_dimension_numbers<[1], [0], [0], [1], [0, 0, 1, 1], [], []>} : vector<8x32xbf16>, vector<32x64xbf16>, vector<8x64xf32> -> vector<8x64xf32>
    %c0_9 = arith.constant 0 : index
    %c0_10 = arith.constant 0 : index
    %11 = vector.load %arg5[%c0_9, %c0_10] : memref<1x64xf32, #tpu.memory_space<vmem>>, vector<1x64xf32>
    %12 = vector.broadcast %11 : vector<1x64xf32> to vector<8x64xf32>
    %13 = arith.addf %10, %12 : vector<8x64xf32>
    %cst_11 = arith.constant 0.000000e+00 : f32
    %14 = vector.broadcast %cst_11 : f32 to vector<8x64xf32>
    %15 = arith.maximumf %13, %14 : vector<8x64xf32>
    %16 = arith.truncf %15 : vector<8x64xf32> to vector<8x64xbf16>
    %c0_12 = arith.constant 0 : index
    %c0_13 = arith.constant 0 : index
    %17 = vector.load %arg6[%c0_12, %c0_13] : memref<64x128xbf16, #tpu.memory_space<vmem>>, vector<64x128xbf16>
    %cst_14 = arith.constant dense<0.000000e+00> : vector<8x128xf32>
    %18 = tpu.matmul %16, %17, %cst_14 {dimension_numbers = #tpu.dot_dimension_numbers<[1], [0], [0], [1], [0, 0, 1, 1], [], []>} : vector<8x64xbf16>, vector<64x128xbf16>, vector<8x128xf32> -> vector<8x128xf32>
    %c0_15 = arith.constant 0 : index
    %c0_16 = arith.constant 0 : index
    %19 = vector.load %arg7[%c0_15, %c0_16] : memref<1x128xf32, #tpu.memory_space<vmem>>, vector<1x128xf32>
    %20 = vector.broadcast %19 : vector<1x128xf32> to vector<8x128xf32>
    %21 = arith.addf %18, %20 : vector<8x128xf32>
    %cst_17 = arith.constant 0.000000e+00 : f32
    %22 = vector.broadcast %cst_17 : f32 to vector<8x128xf32>
    %23 = arith.maximumf %21, %22 : vector<8x128xf32>
    %24 = arith.truncf %23 : vector<8x128xf32> to vector<8x128xbf16>
    %c0_18 = arith.constant 0 : index
    %c0_19 = arith.constant 0 : index
    %25 = vector.load %arg8[%c0_18, %c0_19] : memref<128x256xbf16, #tpu.memory_space<vmem>>, vector<128x256xbf16>
    %cst_20 = arith.constant dense<0.000000e+00> : vector<8x256xf32>
    %26 = tpu.matmul %24, %25, %cst_20 {dimension_numbers = #tpu.dot_dimension_numbers<[1], [0], [0], [1], [0, 0, 1, 1], [], []>} : vector<8x128xbf16>, vector<128x256xbf16>, vector<8x256xf32> -> vector<8x256xf32>
    %c0_21 = arith.constant 0 : index
    %c0_22 = arith.constant 0 : index
    %27 = vector.load %arg9[%c0_21, %c0_22] : memref<1x256xf32, #tpu.memory_space<vmem>>, vector<1x256xf32>
    %28 = vector.broadcast %27 : vector<1x256xf32> to vector<8x256xf32>
    %29 = arith.addf %26, %28 : vector<8x256xf32>
    %cst_23 = arith.constant 0.000000e+00 : f32
    %30 = vector.broadcast %cst_23 : f32 to vector<8x256xf32>
    %31 = arith.maximumf %29, %30 : vector<8x256xf32>
    %32 = arith.truncf %31 : vector<8x256xf32> to vector<8x256xbf16>
    %c0_24 = arith.constant 0 : index
    %c0_25 = arith.constant 0 : index
    %33 = vector.load %arg10[%c0_24, %c0_25] : memref<256x512xbf16, #tpu.memory_space<vmem>>, vector<256x512xbf16>
    %cst_26 = arith.constant dense<0.000000e+00> : vector<8x512xf32>
    %34 = tpu.matmul %32, %33, %cst_26 {dimension_numbers = #tpu.dot_dimension_numbers<[1], [0], [0], [1], [0, 0, 1, 1], [], []>} : vector<8x256xbf16>, vector<256x512xbf16>, vector<8x512xf32> -> vector<8x512xf32>
    %c0_27 = arith.constant 0 : index
    %c0_28 = arith.constant 0 : index
    %35 = vector.load %arg11[%c0_27, %c0_28] : memref<1x512xf32, #tpu.memory_space<vmem>>, vector<1x512xf32>
    %36 = vector.broadcast %35 : vector<1x512xf32> to vector<8x512xf32>
    %37 = arith.addf %34, %36 : vector<8x512xf32>
    %cst_29 = arith.constant 0.000000e+00 : f32
    %38 = vector.broadcast %cst_29 : f32 to vector<8x512xf32>
    %39 = arith.maximumf %37, %38 : vector<8x512xf32>
    %40 = arith.truncf %39 : vector<8x512xf32> to vector<8x512xbf16>
    %c0_30 = arith.constant 0 : index
    %c0_31 = arith.constant 0 : index
    %41 = vector.load %arg12[%c0_30, %c0_31] : memref<512x64xbf16, #tpu.memory_space<vmem>>, vector<512x64xbf16>
    %cst_32 = arith.constant dense<0.000000e+00> : vector<8x64xf32>
    %42 = tpu.matmul %40, %41, %cst_32 {dimension_numbers = #tpu.dot_dimension_numbers<[1], [0], [0], [1], [0, 0, 1, 1], [], []>} : vector<8x512xbf16>, vector<512x64xbf16>, vector<8x64xf32> -> vector<8x64xf32>
    %c0_33 = arith.constant 0 : index
    %c0_34 = arith.constant 0 : index
    %43 = vector.load %arg13[%c0_33, %c0_34] : memref<1x64xf32, #tpu.memory_space<vmem>>, vector<1x64xf32>
    %44 = vector.broadcast %43 : vector<1x64xf32> to vector<8x64xf32>
    %45 = arith.addf %42, %44 : vector<8x64xf32>
    %cst_35 = arith.constant 0.000000e+00 : f32
    %46 = vector.broadcast %cst_35 : f32 to vector<8x64xf32>
    %47 = arith.maximumf %45, %46 : vector<8x64xf32>
    %48 = arith.truncf %47 : vector<8x64xf32> to vector<8x64xbf16>
    %c0_36 = arith.constant 0 : index
    %c0_37 = arith.constant 0 : index
    %49 = vector.load %arg14[%c0_36, %c0_37] : memref<1x64xbf16, #tpu.memory_space<vmem>>, vector<1x64xbf16>
    %cst_38 = arith.constant dense<0.000000e+00> : vector<1x8xf32>
    %50 = tpu.matmul %49, %48, %cst_38 {dimension_numbers = #tpu.dot_dimension_numbers<[1], [1], [0], [0], [0, 0, 1, 0], [], []>} : vector<1x64xbf16>, vector<8x64xbf16>, vector<1x8xf32> -> vector<1x8xf32>
    %c0_39 = arith.constant 0 : index
    %c0_40 = arith.constant 0 : index
    %51 = vector.load %arg15[%c0_39, %c0_40] : memref<1x1xf32, #tpu.memory_space<vmem>>, vector<1x1xf32>
    %52 = vector.broadcast %51 : vector<1x1xf32> to vector<1x8xf32>
    %53 = arith.addf %50, %52 : vector<1x8xf32>
    %54 = arith.negf %53 : vector<1x8xf32>
    %55 = math.exp %54 : vector<1x8xf32>
    %cst_41 = arith.constant 1.000000e+00 : f32
    %56 = vector.broadcast %cst_41 : f32 to vector<1x8xf32>
    %57 = arith.addf %56, %55 : vector<1x8xf32>
    %58 = arith.divf %56, %57 : vector<1x8xf32>
    %c0_42 = arith.constant 0 : index
    %c0_43 = arith.constant 0 : index
    %59 = vector.load %arg16[%c0_42, %c0_43] : memref<1x8xf32, #tpu.memory_space<vmem>>, vector<1x8xf32>
    tpu.vector_store %arg16[%c0_42, %c0_43], %58 {strides = array<i32>} : memref<1x8xf32, #tpu.memory_space<vmem>>, vector<1x8xf32>,
    return
  }
  func.func @transform_0(%arg0: i32) -> (i32, i32) {
    %c0_i32 = arith.constant 0 : i32
    %c0_i32_0 = arith.constant 0 : i32
    return %arg0, %c0_i32 : i32, i32
  }
  func.func @transform_1(%arg0: i32) -> (i32, i32) {
    %c0_i32 = arith.constant 0 : i32
    %c0_i32_0 = arith.constant 0 : i32
    %c0_i32_1 = arith.constant 0 : i32
    return %c0_i32, %c0_i32_0 : i32, i32
  }
  func.func @transform_2(%arg0: i32) -> (i32, i32) {
    %c0_i32 = arith.constant 0 : i32
    %c0_i32_0 = arith.constant 0 : i32
    %c0_i32_1 = arith.constant 0 : i32
    return %c0_i32, %c0_i32_0 : i32, i32
  }
  func.func @transform_3(%arg0: i32) -> (i32, i32) {
    %c0_i32 = arith.constant 0 : i32
    %c0_i32_0 = arith.constant 0 : i32
    %c0_i32_1 = arith.constant 0 : i32
    return %c0_i32, %c0_i32_0 : i32, i32
  }
  func.func @transform_4(%arg0: i32) -> (i32, i32) {
    %c0_i32 = arith.constant 0 : i32
    %c0_i32_0 = arith.constant 0 : i32
    %c0_i32_1 = arith.constant 0 : i32
    return %c0_i32, %c0_i32_0 : i32, i32
  }
  func.func @transform_5(%arg0: i32) -> (i32, i32) {
    %c0_i32 = arith.constant 0 : i32
    %c0_i32_0 = arith.constant 0 : i32
    %c0_i32_1 = arith.constant 0 : i32
    return %c0_i32, %c0_i32_0 : i32, i32
  }
  func.func @transform_6(%arg0: i32) -> (i32, i32) {
    %c0_i32 = arith.constant 0 : i32
    %c0_i32_0 = arith.constant 0 : i32
    %c0_i32_1 = arith.constant 0 : i32
    return %c0_i32, %c0_i32_0 : i32, i32
  }
  func.func @transform_7(%arg0: i32) -> (i32, i32) {
    %c0_i32 = arith.constant 0 : i32
    %c0_i32_0 = arith.constant 0 : i32
    %c0_i32_1 = arith.constant 0 : i32
    return %c0_i32, %c0_i32_0 : i32, i32
  }
  func.func @transform_8(%arg0: i32) -> (i32, i32) {
    %c0_i32 = arith.constant 0 : i32
    %c0_i32_0 = arith.constant 0 : i32
    %c0_i32_1 = arith.constant 0 : i32
    return %c0_i32, %c0_i32_0 : i32, i32
  }
  func.func @transform_9(%arg0: i32) -> (i32, i32) {
    %c0_i32 = arith.constant 0 : i32
    %c0_i32_0 = arith.constant 0 : i32
    %c0_i32_1 = arith.constant 0 : i32
    return %c0_i32, %c0_i32_0 : i32, i32
  }
  func.func @transform_10(%arg0: i32) -> (i32, i32) {
    %c0_i32 = arith.constant 0 : i32
    %c0_i32_0 = arith.constant 0 : i32
    %c0_i32_1 = arith.constant 0 : i32
    return %c0_i32, %c0_i32_0 : i32, i32
  }
  func.func @transform_11(%arg0: i32) -> (i32, i32) {
    %c0_i32 = arith.constant 0 : i32
    %c0_i32_0 = arith.constant 0 : i32
    %c0_i32_1 = arith.constant 0 : i32
    return %c0_i32, %c0_i32_0 : i32, i32
  }
  func.func @transform_12(%arg0: i32) -> (i32, i32) {
    %c0_i32 = arith.constant 0 : i32
    %c0_i32_0 = arith.constant 0 : i32
    %c0_i32_1 = arith.constant 0 : i32
    return %c0_i32, %c0_i32_0 : i32, i32
  }
  func.func @transform_13(%arg0: i32) -> (i32, i32) {
    %c0_i32 = arith.constant 0 : i32
    %c0_i32_0 = arith.constant 0 : i32
    %c0_i32_1 = arith.constant 0 : i32
    return %c0_i32, %c0_i32_0 : i32, i32
  }
  func.func @transform_14(%arg0: i32) -> (i32, i32) {
    %c0_i32 = arith.constant 0 : i32
    %c0_i32_0 = arith.constant 0 : i32
    %c0_i32_1 = arith.constant 0 : i32
    return %c0_i32, %c0_i32_0 : i32, i32
  }
  func.func @transform_15(%arg0: i32) -> (i32, i32) {
    %c0_i32 = arith.constant 0 : i32
    %c0_i32_0 = arith.constant 0 : i32
    return %c0_i32, %arg0 : i32, i32
  }
}

</mosaic_0001>

<bundles_post_ra>
// kernel: tpu_custom_call.1
= control target key start
LH: loop header
LB: loop body
LE: loop exit
PB: predicated region body
PF: predicated region fallthrough
CT: control target
= control target key end

     0   :  { %s2150_s0 = inlined_call_operand.vmem [shape: bf16[8,28], index: 0, kind: input, shape index: {}]   ;;  %s2151_s1 = inlined_call_operand.vmem [shape: bf16[28,32], index: 1, kind: input, shape index: {}]   ;;  %s2152_s2 = inlined_call_operand.vmem [shape: f32[1,32], index: 2, kind: input, shape index: {}]   ;;  %s2153_s3 = inlined_call_operand.vmem [shape: bf16[32,64], index: 3, kind: input, shape index: {}]   ;;  %s2154_s4 = inlined_call_operand.vmem [shape: f32[1,64], index: 4, kind: input, shape index: {}]   ;;  %s2155_s5 = inlined_call_operand.vmem [shape: bf16[64,128], index: 5, kind: input, shape index: {}]   ;;  %s2156_s6 = inlined_call_operand.vmem [shape: f32[1,128], index: 6, kind: input, shape index: {}]   ;;  %s2157_s7 = inlined_call_operand.vmem [shape: bf16[128,256], index: 7, kind: input, shape index: {}]   ;;  %s2158_s8 = inlined_call_operand.vmem [shape: f32[1,256], index: 8, kind: input, shape index: {}]   ;;  %s2159_s9 = inlined_call_operand.hbm [shape: bf16[256,512], index: 9, kind: input, shape index: {}]   ;;  %s2160_s10 = inlined_call_operand.vmem [shape: f32[1,512], index: 10, kind: input, shape index: {}]   ;;  %s2161_s11 = inlined_call_operand.vmem [shape: bf16[512,64], index: 11, kind: input, shape index: {}]   ;;  %s2162_s12 = inlined_call_operand.vmem [shape: f32[1,64], index: 12, kind: input, shape index: {}]   ;;  %s2163_s13 = inlined_call_operand.vmem [shape: bf16[1,64], index: 13, kind: input, shape index: {}]   ;;  %s2164_s14 = inlined_call_operand.<no memory space> [shape: f32[1,1], index: 14, kind: input, shape index: {}]   ;;  %s2165_s15 = inlined_call_operand.hbm [shape: f32[1,8], index: 15, kind: output, shape index: {}]  }
   0x1   :  { %v20_v0 = vstv %s2164_s14 }
   0x2   :  { %21 = vst [vmem:[#allocation2] sm:$0x1] %v20_v0 }
   0x3   :  { %22 = vsyncpa [#allocation4], 0 }
   0x4   :  { %23 = vsyncpa [#allocation5], 0  ;;  %s1809_s20 = smov [#allocation3]   ;;  %s1761_s24 = scalar_lea.hbm %s2159_s9, 8192 }
   0x5   :  { %s47_s21 = sshll.u32 %s1809_s20, 4  ;;  %p1762_p0 = scmp.ne.s32.totalorder %s2159_s9, %s1761_s24  ;;  %s48_s21 = int_to_ptr.vmem [resolvable:$true] %s47_s21 }
   0x6   :  { %p1765_p1 = scmp.lt.u32.totalorder %s1761_s24, %s2159_s9 }
   0x8   :  { %p1767_p2 = pnand %p1765_p1, %p1762_p0 }
   0xa   :  { %1770 = shalt.err (!%p1767_p2)
}
   0xb   :  { %s1771_s14 = scalar_lea.vmem %s48_s21, 8192  ;;  %p1776_p4 = scmp.lt.s32.totalorder %s48_s21, %s48_s21 }
   0xc   :  { %p1772_p3 = scmp.ne.s32.totalorder %s48_s21, %s1771_s14  ;;  %p1777_p5 = scmp.lt.s32.totalorder %s1771_s14, %s1771_s14 }
   0xe   :  { %p1778_p6 = por %p1777_p5, %p1776_p4 }
  0x10   :  { %p1779_p7 = pnand %p1778_p6, %p1772_p3 }
  0x12   :  { %1782 = shalt.err (!%p1779_p7)
}
  0x13   :  { %s1810_s29 = smov 256   ;;  %s1811_s30 = smov 16  }
  0x14   :  { %53 = dma.hbm_to_vmem [thread:$0]  %s2159_s9, 8192, %s48_s21, [#allocation4], %s1810_s29, %s1810_s29, %s1811_s30  }
  0x15   :  { %1805 = dma.done.wait [#allocation4], 8192  }
  0x16   :  { %1806 = vsyncadd [#allocation4], 4294959104  ;;  %v1812_v1 = vmov 0.0   ;;  %vm1813_vm0 = vmmov 0   ;;  %v1597_v2 = vld [vmem:[%s2151_s1] sm:$0xff]   ;;  %vm95_vm1 = vcmask 1045504  }
  0x17   :  { %1555 = vmatprep.subr.bf16.mxu0 %v1812_v1  ;;  %1559 = vmatprep.mubr.msk.bf16.mxu0 %vm1813_vm0, %v1812_v1  ;;  %v1598_v3 = vld [vmem:[%s2151_s1 + $0x8] sm:$0x3f]   ;;  %vm91_vm2 = vcmask 228352   ;;  %v68_v5 = vld [vmem:[%s2150_s0] sm:$0xf]  ;;  %vm164_vm3 = vcmask 261120  }
  0x18   :  { %1563 = vmatprep.subr.bf16.mxu1 %v1812_v1  ;;  %1567 = vmatprep.mubr.msk.bf16.mxu1 %vm1813_vm0, %v1812_v1  ;;  %v97_v4 = vsel %vm95_vm1, %v1598_v3, 0  ;;  %v1599_v6 = vld [vmem:[%s2153_s3] sm:$0xff]   ;;  %v1600_v7 = vld [vmem:[%s2153_s3 + $0x8] sm:$0xff]   ;;  %v1603_v18 = vld [vmem:[%s2155_s5 + $0x10] sm:$0xff]   ;;  %vm249_vm4 = vcmask 523264   ;;  %v1814_v44 = vmov 0  }
  0x19   :  { %1556 = vmatpush3.bf16.msra.mxu0 %v1597_v2  ;;  %1564 = vmatpush3.bf16.msra.mxu1 %v1599_v6  ;;  %v1601_v8 = vld [vmem:[%s2155_s5] sm:$0xff]   ;;  %v1602_v9 = vld [vmem:[%s2155_s5 + $0x8] sm:$0xff]   ;;  %v1604_v19 = vld [vmem:[%s2155_s5 + $0x18] sm:$0xff]   ;;  %vm1352_vm5 = vcmask 57344  }
  0x1a   :  { %1557 = vmatprep.subr.bf16.mxu0 %v1812_v1  ;;  %1565 = vmatprep.subr.bf16.mxu1 %v1812_v1  ;;  %v1369_v10 = vld [vmem:[%s2152_s2] ss:$0 sm:$0xff]  ;;  %v1607_v21 = vld [vmem:[%s2157_s7 + $0x4] ss:$8 sps:$4 sm:$0xff]   ;;  %v1610_v22 = vld [vmem:[%s2157_s7 + $0x14] ss:$8 sps:$4 sm:$0xff]  }
  0x1b   :  { %v1605_v20 = vld [vmem:[%s2157_s7] ss:$8 sps:$4 sm:$0xff]   ;;  %v1608_v23 = vld [vmem:[%s2157_s7 + $0x10] ss:$8 sps:$4 sm:$0xff]   ;;  %v1613_v24 = vld [vmem:[%s2157_s7 + $0x24] ss:$8 sps:$4 sm:$0xff]   ;;  %1596 = vset.pattern.permute.xlu0 %v1814_v44 }
  0x1c   :  { %v1611_v25 = vld [vmem:[%s2157_s7 + $0x20] ss:$8 sps:$4 sm:$0xff]   ;;  %v1616_v26 = vld [vmem:[%s2157_s7 + $0x34] ss:$8 sps:$4 sm:$0xff]   ;;  %v1614_v27 = vld [vmem:[%s2157_s7 + $0x30] ss:$8 sps:$4 sm:$0xff]  }
  0x1d   :  { %1558 = vmatpush3.bf16.msra.mxu0 %v97_v4  ;;  %1566 = vmatpush3.bf16.msra.mxu1 %v1600_v7  ;;  %v1619_v28 = vld [vmem:[%s2157_s7 + $0x44] ss:$8 sps:$4 sm:$0xff]   ;;  %v1617_v29 = vld [vmem:[%s2157_s7 + $0x40] ss:$8 sps:$4 sm:$0xff]   ;;  %v1622_v30 = vld [vmem:[%s2157_s7 + $0x54] ss:$8 sps:$4 sm:$0xff]  }
  0x1e   :  { %1571 = vmatprep.subr.bf16.mxu0 %v1812_v1  ;;  %403 = vmatprep.subr.bf16.mxu1 %v1607_v21  ;;  %v1620_v31 = vld [vmem:[%s2157_s7 + $0x50] ss:$8 sps:$4 sm:$0xff]   ;;  %v1625_v32 = vld [vmem:[%s2157_s7 + $0x64] ss:$8 sps:$4 sm:$0xff]   ;;  %v1623_v33 = vld [vmem:[%s2157_s7 + $0x60] ss:$8 sps:$4 sm:$0xff]  }
  0x1f   :  { %v1373_v34 = vld [vmem:[%s2154_s4] ss:$0 sm:$0xff]  ;;  %v1628_v42 = vld [vmem:[%s2157_s7 + $0x74] ss:$8 sps:$4 sm:$0xff]   ;;  %v1626_v43 = vld [vmem:[%s2157_s7 + $0x70] ss:$8 sps:$4 sm:$0xff]  }
  0x20   :  { %1560 = vmatmul.mubr.msk.bf16.vlgmr.msra.gmra.mrb[0].mxu0 %vm91_vm2, %v68_v5  ;;  %v1629_v45 = vld [vmem:[#allocation3] ss:$16 sps:$4 sm:$0xff]   ;;  %v1631_v46 = vld [vmem:[#allocation3 + $0x4] ss:$16 sps:$4 sm:$0xff]   ;;  %v1634_v47 = vld [vmem:[#allocation3 + $0xc] ss:$16 sps:$4 sm:$0xff]  }
  0x21   :  { %1579 = vmatprep.mubr.msk.bf16.mxu0 %vm1813_vm0, %v1812_v1  ;;  %1572 = vmatpush3.bf16.msra.mxu0 %v1601_v8  ;;  %v1637_v48 = vld [vmem:[#allocation3 + $0x24] ss:$16 sps:$4 sm:$0xff]   ;;  %v1635_v49 = vld [vmem:[#allocation3 + $0x20] ss:$16 sps:$4 sm:$0xff]   ;;  %v1638_v21 = vld [vmem:[#allocation3 + $0x28] ss:$16 sps:$4 sm:$0xff]  }
  0x22   :  { %1573 = vmatprep.subr.bf16.mxu0 %v1812_v1  ;;  %v1643_v50 = vld [vmem:[#allocation3 + $0x44] ss:$16 sps:$4 sm:$0xff]   ;;  %v1641_v51 = vld [vmem:[#allocation3 + $0x40] ss:$16 sps:$4 sm:$0xff]  }
  0x23   :  { %v1649_v52 = vld [vmem:[#allocation3 + $0x64] ss:$16 sps:$4 sm:$0xff]   ;;  %v1647_v53 = vld [vmem:[#allocation3 + $0x60] ss:$16 sps:$4 sm:$0xff]  }
  0x24   :  { %v1655_v54 = vld [vmem:[#allocation3 + $0x84] ss:$16 sps:$4 sm:$0xff]   ;;  %v1653_v55 = vld [vmem:[#allocation3 + $0x80] ss:$16 sps:$4 sm:$0xff]  }
  0x25   :  { %1574 = vmatpush3.bf16.msra.mxu0 %v1602_v9  ;;  %v1661_v56 = vld [vmem:[#allocation3 + $0xa4] ss:$16 sps:$4 sm:$0xff]   ;;  %v1659_v57 = vld [vmem:[#allocation3 + $0xa0] ss:$16 sps:$4 sm:$0xff]  }
  0x26   :  { %1575 = vmatprep.subr.bf16.mxu0 %v1812_v1  ;;  %v1667_v58 = vld [vmem:[#allocation3 + $0xc4] ss:$16 sps:$4 sm:$0xff]   ;;  %v1665_v59 = vld [vmem:[#allocation3 + $0xc0] ss:$16 sps:$4 sm:$0xff]  }
  0x27   :  { %v1673_v60 = vld [vmem:[#allocation3 + $0xe4] ss:$16 sps:$4 sm:$0xff]   ;;  %v1671_v61 = vld [vmem:[#allocation3 + $0xe0] ss:$16 sps:$4 sm:$0xff]  }
  0x28   :  { %v1679_v62 = vld [vmem:[#allocation3 + $0x104] ss:$16 sps:$4 sm:$0xff]   ;;  %v1677_v63 = vld [vmem:[#allocation3 + $0x100] ss:$16 sps:$4 sm:$0xff]  }
  0x29   :  { %1576 = vmatpush3.bf16.msra.mxu0 %v1603_v18  ;;  %v1685_v0 = vld [vmem:[#allocation3 + $0x124] ss:$16 sps:$4 sm:$0xff]   ;;  %v1683_v2 = vld [vmem:[#allocation3 + $0x120] ss:$16 sps:$4 sm:$0xff]   ;;  %v1632_v18 = vld [vmem:[#allocation3 + $0x8] ss:$16 sps:$4 sm:$0xff]  }
  0x2a   :  { %1577 = vmatprep.subr.bf16.mxu0 %v1812_v1  ;;  %v1691_v3 = vld [vmem:[#allocation3 + $0x144] ss:$16 sps:$4 sm:$0xff]   ;;  %v1689_v4 = vld [vmem:[#allocation3 + $0x140] ss:$16 sps:$4 sm:$0xff]  }
  0x2b   :  { %v1697_v5 = vld [vmem:[#allocation3 + $0x164] ss:$16 sps:$4 sm:$0xff]   ;;  %v1695_v6 = vld [vmem:[#allocation3 + $0x160] ss:$16 sps:$4 sm:$0xff]  }
  0x2c   :  { %v1703_v7 = vld [vmem:[#allocation3 + $0x184] ss:$16 sps:$4 sm:$0xff]   ;;  %v1701_v8 = vld [vmem:[#allocation3 + $0x180] ss:$16 sps:$4 sm:$0xff]  }
  0x2d   :  { %1578 = vmatpush3.bf16.msra.mxu0 %v1604_v19  ;;  %v1709_v9 = vld [vmem:[#allocation3 + $0x1a4] ss:$16 sps:$4 sm:$0xff]  }
  0x2e   :  { %854 = vmatprep.subr.bf16.mxu0 %v1631_v46  ;;  %v1715_v46 = vld [vmem:[#allocation3 + $0x1c4] ss:$16 sps:$4 sm:$0xff]  }
  0xf3   :  { %v133_v11 = vpop.f32.mrb[0].mxu0 }
  0xf4   :  { %v134_v12 = vadd.f32 %v1369_v10, %v133_v11  ;;  %v1561_v13 = vpop.f32.mrb[1].mxu0  ;;  %v1707_v10 = vld [vmem:[#allocation3 + $0x1a0] ss:$16 sps:$4 sm:$0xff]   ;;  %v1377_v11 = vld [vmem:[%s2156_s6] ss:$0 sm:$0xff] }
  0xf5   :  { %v136_v14 = vpop.f32.mrb[2].mxu0 }
  0xf6   :  { %v139_v15 = vmax.f32 %v134_v12, 0.0  ;;  %v1562_v16 = vpop.f32.mrb[3].mxu0 }
  0xf8   :  { %v140_v17 = vpack.c.bf16 %v139_v15, %v139_v15 }
  0xfa   :  { %1568 = vmatmul.mubr.msk.bf16.vlgmr.msra.gmra.mrb[0].mxu1 %vm164_vm3, %v140_v17 }
  0xfb   :  { %404 = vmatpush1.bf16.msra.mxu1 %v1605_v20  ;;  %435 = vmatprep.mubr.bf16.mxu1 %v1814_v44  ;;  %v1640_v20 = vld [vmem:[#allocation3 + $0x2c] ss:$16 sps:$4 sm:$0xff]  }
  0xfc   :  { %405 = vmatprep.subr.bf16.mxu1 %v1610_v22  ;;  %v1646_v22 = vld [vmem:[#allocation3 + $0x4c] ss:$16 sps:$4 sm:$0xff]  }
  0xfd   :  { %v1712_v44 = vld [vmem:[#allocation3 + $0x1ac] ss:$16 sps:$4 sm:$0xff]  }
  0xff   :  { %406 = vmatpush1.bf16.msra.mxu1 %v1608_v23  ;;  %v1644_v23 = vld [vmem:[#allocation3 + $0x48] ss:$16 sps:$4 sm:$0xff]  }
 0x100   :  { %407 = vmatprep.subr.bf16.mxu1 %v1613_v24  ;;  %v1652_v24 = vld [vmem:[#allocation3 + $0x6c] ss:$16 sps:$4 sm:$0xff]  }
 0x103   :  { %408 = vmatpush1.bf16.msra.mxu1 %v1611_v25  ;;  %v1650_v25 = vld [vmem:[#allocation3 + $0x68] ss:$16 sps:$4 sm:$0xff]  }
 0x104   :  { %409 = vmatprep.subr.bf16.mxu1 %v1616_v26  ;;  %v1658_v26 = vld [vmem:[#allocation3 + $0x8c] ss:$16 sps:$4 sm:$0xff]  }
 0x107   :  { %410 = vmatpush1.bf16.msra.mxu1 %v1614_v27  ;;  %v1656_v27 = vld [vmem:[#allocation3 + $0x88] ss:$16 sps:$4 sm:$0xff]  }
 0x108   :  { %411 = vmatprep.subr.bf16.mxu1 %v1619_v28  ;;  %v1664_v28 = vld [vmem:[#allocation3 + $0xac] ss:$16 sps:$4 sm:$0xff]  }
 0x10b   :  { %412 = vmatpush1.bf16.msra.mxu1 %v1617_v29  ;;  %v1662_v29 = vld [vmem:[#allocation3 + $0xa8] ss:$16 sps:$4 sm:$0xff]  }
 0x10c   :  { %413 = vmatprep.subr.bf16.mxu1 %v1622_v30  ;;  %v1670_v30 = vld [vmem:[#allocation3 + $0xcc] ss:$16 sps:$4 sm:$0xff]  }
 0x10f   :  { %414 = vmatpush1.bf16.msra.mxu1 %v1620_v31  ;;  %v1668_v31 = vld [vmem:[#allocation3 + $0xc8] ss:$16 sps:$4 sm:$0xff]  }
 0x110   :  { %415 = vmatprep.subr.bf16.mxu1 %v1625_v32  ;;  %v1676_v32 = vld [vmem:[#allocation3 + $0xec] ss:$16 sps:$4 sm:$0xff]  }
 0x113   :  { %416 = vmatpush1.bf16.msra.mxu1 %v1623_v33  ;;  %v1674_v33 = vld [vmem:[#allocation3 + $0xe8] ss:$16 sps:$4 sm:$0xff]  }
 0x114   :  { %417 = vmatprep.subr.bf16.mxu1 %v1628_v42  ;;  %v1706_v42 = vld [vmem:[#allocation3 + $0x18c] ss:$16 sps:$4 sm:$0xff]  }
 0x117   :  { %418 = vmatpush1.bf16.msra.mxu1 %v1626_v43  ;;  %v1704_v43 = vld [vmem:[#allocation3 + $0x188] ss:$16 sps:$4 sm:$0xff]  }
 0x118   :  { %895 = vmatprep.subr.bf16.mxu1 %v1634_v47  ;;  %v1718_v47 = vld [vmem:[#allocation3 + $0x1cc] ss:$16 sps:$4 sm:$0xff]  }
 0x1cd   :  { %v202_v35 = vpop.f32.mrb[0].mxu1 }
 0x1ce   :  { %v203_v36 = vadd.f32 %v1373_v34, %v202_v35  ;;  %v1569_v37 = vpop.f32.mrb[1].mxu1  ;;  %v1682_v34 = vld [vmem:[#allocation3 + $0x10c] ss:$16 sps:$4 sm:$0xff]   ;;  %v1680_v35 = vld [vmem:[#allocation3 + $0x108] ss:$16 sps:$4 sm:$0xff]  }
 0x1cf   :  { %v205_v38 = vpop.f32.mrb[2].mxu1  ;;  %v1686_v37 = vld [vmem:[#allocation3 + $0x128] ss:$16 sps:$4 sm:$0xff]  }
 0x1d0   :  { %v208_v39 = vmax.f32 %v203_v36, 0.0  ;;  %v1570_v40 = vpop.f32.mrb[3].mxu1  ;;  %v1688_v36 = vld [vmem:[#allocation3 + $0x12c] ss:$16 sps:$4 sm:$0xff]  }
 0x1d1   :  { %v1694_v38 = vld [vmem:[#allocation3 + $0x14c] ss:$16 sps:$4 sm:$0xff]  }
 0x1d2   :  { %v209_v41 = vpack.c.bf16 %v208_v39, %v208_v39  ;;  %v1692_v39 = vld [vmem:[#allocation3 + $0x148] ss:$16 sps:$4 sm:$0xff]   ;;  %v1700_v40 = vld [vmem:[#allocation3 + $0x16c] ss:$16 sps:$4 sm:$0xff]  }
 0x1d4   :  { %1580 = vmatmul.mubr.msk.bf16.vlgmr.msra.gmra.mrb[4].mxu0 %vm249_vm4, %v209_v41  ;;  %v1698_v41 = vld [vmem:[#allocation3 + $0x168] ss:$16 sps:$4 sm:$0xff]  }
 0x1d5   :  { %855 = vmatpush1.bf16.msra.mxu0 %v1629_v45  ;;  %v1710_v45 = vld [vmem:[#allocation3 + $0x1a8] ss:$16 sps:$4 sm:$0xff]  }
 0x1d6   :  { %856 = vmatprep.subr.bf16.mxu0 %v1637_v48  ;;  %v1713_v48 = vld [vmem:[#allocation3 + $0x1c0] ss:$16 sps:$4 sm:$0xff]  }
 0x1d9   :  { %857 = vmatpush1.bf16.msra.mxu0 %v1635_v49  ;;  %v1716_v49 = vld [vmem:[#allocation3 + $0x1c8] ss:$16 sps:$4 sm:$0xff]  }
 0x1da   :  { %858 = vmatprep.subr.bf16.mxu0 %v1643_v50  ;;  %v1721_v50 = vld [vmem:[#allocation3 + $0x1e4] ss:$16 sps:$4 sm:$0xff]  }
 0x1dd   :  { %859 = vmatpush1.bf16.msra.mxu0 %v1641_v51  ;;  %v1724_v51 = vld [vmem:[#allocation3 + $0x1ec] ss:$16 sps:$4 sm:$0xff]  }
 0x1de   :  { %860 = vmatprep.subr.bf16.mxu0 %v1649_v52  ;;  %v1719_v52 = vld [vmem:[#allocation3 + $0x1e0] ss:$16 sps:$4 sm:$0xff]  }
 0x1e1   :  { %861 = vmatpush1.bf16.msra.mxu0 %v1647_v53  ;;  %v1722_v53 = vld [vmem:[#allocation3 + $0x1e8] ss:$16 sps:$4 sm:$0xff]  }
 0x1e2   :  { %862 = vmatprep.subr.bf16.mxu0 %v1655_v54  ;;  %v1725_v54 = vld [vmem:[%s2161_s11 + $0x40] sm:$0xff]  }
 0x1e5   :  { %863 = vmatpush1.bf16.msra.mxu0 %v1653_v55  ;;  %v1726_v55 = vld [vmem:[%s2161_s11 + $0xc0] sm:$0xff]  }
 0x1e6   :  { %864 = vmatprep.subr.bf16.mxu0 %v1661_v56  ;;  %v313_v56 = vlaneseq }
 0x1e9   :  { %865 = vmatpush1.bf16.msra.mxu0 %v1659_v57  ;;  %v2016_v57 = vshrl.u32 %v313_v56, 7 }
 0x1ea   :  { %866 = vmatprep.subr.bf16.mxu0 %v1667_v58 }
 0x1eb   :  { %v2019_v58 = vsub.s32 0, %v2016_v57 }
 0x1ed   :  { %867 = vmatpush1.bf16.msra.mxu0 %v1665_v59  ;;  %v311_v59 = vld [vmem:[%s2158_s8] sm:$0x3] }
 0x1ee   :  { %868 = vmatprep.subr.bf16.mxu0 %v1673_v60  ;;  %v319_v60 = vsub.s32 1, %v2016_v57 }
 0x1f1   :  { %869 = vmatpush1.bf16.msra.mxu0 %v1671_v61  ;;  %v316_v61 = vrot.slane %v311_v59, %v2019_v58 }
 0x1f2   :  { %870 = vmatprep.subr.bf16.mxu0 %v1679_v62  ;;  %v320_v62 = vrot.slane %v311_v59, %v319_v60 }
 0x1f5   :  { %871 = vmatpush1.bf16.msra.mxu0 %v1677_v63 }
 0x1f6   :  { %872 = vmatprep.subr.bf16.mxu0 %v1685_v0 }
 0x1f9   :  { %873 = vmatpush1.bf16.msra.mxu0 %v1683_v2 }
 0x1fa   :  { %874 = vmatprep.subr.bf16.mxu0 %v1691_v3 }
 0x1fd   :  { %875 = vmatpush1.bf16.msra.mxu0 %v1689_v4 }
 0x1fe   :  { %876 = vmatprep.subr.bf16.mxu0 %v1697_v5 }
 0x201   :  { %877 = vmatpush1.bf16.msra.mxu0 %v1695_v6 }
 0x202   :  { %878 = vmatprep.subr.bf16.mxu0 %v1703_v7 }
 0x205   :  { %879 = vmatpush1.bf16.msra.mxu0 %v1701_v8 }
 0x206   :  { %880 = vmatprep.subr.bf16.mxu0 %v1709_v9  ;;  %v1727_v9 = vld [vmem:[%s2161_s11] sm:$0xff]  }
 0x209   :  { %881 = vmatpush1.bf16.msra.mxu0 %v1707_v10  ;;  %v1728_v10 = vld [vmem:[%s2161_s11 + $0x80] sm:$0xff]  }
 0x20a   :  { %882 = vmatprep.subr.bf16.mxu0 %v1715_v46 }
 0x20d   :  { %883 = vmatpush1.bf16.msra.mxu0 %v1713_v48 }
 0x20e   :  { %884 = vmatprep.subr.bf16.mxu0 %v1721_v50 }
 0x211   :  { %885 = vmatpush1.bf16.msra.mxu0 %v1719_v52 }
 0x212   :  { %1509 = vmatprep.subr.bf16.mxu0 %v1725_v54 }
 0x2a7   :  { %v287_v12 = vpop.f32.mrb[4].mxu0 }
 0x2a8   :  { %v288_v13 = vadd.f32 %v1377_v11, %v287_v12  ;;  %v1581_v14 = vpop.f32.mrb[5].mxu0  ;;  %v1729_v12 = vld [vmem:[%s2161_s11 + $0x48] sm:$0xff]  }
 0x2a9   :  { %v290_v15 = vpop.f32.mrb[6].mxu0  ;;  %v1731_v14 = vld [vmem:[%s2161_s11 + $0x8] sm:$0xff]  }
 0x2aa   :  { %v293_v16 = vmax.f32 %v288_v13, 0.0  ;;  %v1582_v17 = vpop.f32.mrb[7].mxu0  ;;  %v1730_v13 = vld [vmem:[%s2161_s11 + $0xc8] sm:$0xff]  }
 0x2ab   :  { %v1732_v15 = vld [vmem:[%s2161_s11 + $0x88] sm:$0xff]   ;;  %v1734_v17 = vld [vmem:[%s2161_s11 + $0xd0] sm:$0xff]  }
 0x2ac   :  { %v294_v19 = vpack.c.bf16 %v293_v16, %v293_v16  ;;  %v1733_v16 = vld [vmem:[%s2161_s11 + $0x50] sm:$0xff]  }
 0x2ae   :  { %436 = vmatmul.mubr.bf16.vlgmr.msra.gmra.mrb[4].mxu1 %v294_v19  ;;  %v1736_v19 = vld [vmem:[%s2161_s11 + $0x90] sm:$0xff]  }
 0x2af   :  { %896 = vmatpush1.bf16.msra.mxu1 %v1632_v18  ;;  %v1735_v18 = vld [vmem:[%s2161_s11 + $0x10] sm:$0xff]  }
 0x2b0   :  { %897 = vmatprep.subr.bf16.mxu1 %v1640_v20  ;;  %v1737_v20 = vld [vmem:[%s2161_s11 + $0x58] sm:$0xff]  }
 0x2b3   :  { %898 = vmatpush1.bf16.msra.mxu1 %v1638_v21  ;;  %v1738_v21 = vld [vmem:[%s2161_s11 + $0xd8] sm:$0xff]  }
 0x2b4   :  { %899 = vmatprep.subr.bf16.mxu1 %v1646_v22  ;;  %v1739_v22 = vld [vmem:[%s2161_s11 + $0x18] sm:$0xff]  }
 0x2b7   :  { %900 = vmatpush1.bf16.msra.mxu1 %v1644_v23  ;;  %v1740_v23 = vld [vmem:[%s2161_s11 + $0x98] sm:$0xff]  }
 0x2b8   :  { %901 = vmatprep.subr.bf16.mxu1 %v1652_v24  ;;  %v1741_v24 = vld [vmem:[%s2161_s11 + $0x60] sm:$0xff]  }
 0x2bb   :  { %902 = vmatpush1.bf16.msra.mxu1 %v1650_v25  ;;  %v1742_v25 = vld [vmem:[%s2161_s11 + $0xe0] sm:$0xff]  }
 0x2bc   :  { %903 = vmatprep.subr.bf16.mxu1 %v1658_v26  ;;  %v1743_v26 = vld [vmem:[%s2161_s11 + $0x20] sm:$0xff]  }
 0x2bf   :  { %904 = vmatpush1.bf16.msra.mxu1 %v1656_v27  ;;  %v1744_v27 = vld [vmem:[%s2161_s11 + $0xa0] sm:$0xff]  }
 0x2c0   :  { %905 = vmatprep.subr.bf16.mxu1 %v1664_v28  ;;  %v1745_v28 = vld [vmem:[%s2161_s11 + $0x68] sm:$0xff]  }
 0x2c3   :  { %906 = vmatpush1.bf16.msra.mxu1 %v1662_v29  ;;  %v1746_v29 = vld [vmem:[%s2161_s11 + $0xe8] sm:$0xff]  }
 0x2c4   :  { %907 = vmatprep.subr.bf16.mxu1 %v1670_v30  ;;  %v1747_v30 = vld [vmem:[%s2161_s11 + $0x28] sm:$0xff]  }
 0x2c7   :  { %908 = vmatpush1.bf16.msra.mxu1 %v1668_v31  ;;  %v1748_v31 = vld [vmem:[%s2161_s11 + $0xa8] sm:$0xff]  }
 0x2c8   :  { %909 = vmatprep.subr.bf16.mxu1 %v1676_v32  ;;  %v1749_v32 = vld [vmem:[%s2161_s11 + $0x70] sm:$0xff]  }
 0x2cb   :  { %910 = vmatpush1.bf16.msra.mxu1 %v1674_v33  ;;  %v1750_v33 = vld [vmem:[%s2161_s11 + $0xf0] sm:$0xff]  }
 0x2cc   :  { %911 = vmatprep.subr.bf16.mxu1 %v1682_v34  ;;  %v1751_v34 = vld [vmem:[%s2161_s11 + $0x30] sm:$0xff]  }
 0x2cf   :  { %912 = vmatpush1.bf16.msra.mxu1 %v1680_v35  ;;  %v1752_v35 = vld [vmem:[%s2161_s11 + $0xb0] sm:$0xff]  }
 0x2d0   :  { %913 = vmatprep.subr.bf16.mxu1 %v1688_v36  ;;  %v1753_v36 = vld [vmem:[%s2161_s11 + $0x78] sm:$0xff]  }
 0x2d3   :  { %914 = vmatpush1.bf16.msra.mxu1 %v1686_v37  ;;  %v1754_v37 = vld [vmem:[%s2161_s11 + $0xf8] sm:$0xff]  }
 0x2d4   :  { %915 = vmatprep.subr.bf16.mxu1 %v1694_v38  ;;  %v1755_v38 = vld [vmem:[%s2161_s11 + $0x38] sm:$0xff]  }
 0x2d7   :  { %916 = vmatpush1.bf16.msra.mxu1 %v1692_v39  ;;  %v1756_v39 = vld [vmem:[%s2161_s11 + $0xb8] sm:$0xff]  }
 0x2d8   :  { %917 = vmatprep.subr.bf16.mxu1 %v1700_v40  ;;  %v524_v40 = vsub.s32 2, %v2016_v57 }
 0x2db   :  { %918 = vmatpush1.bf16.msra.mxu1 %v1698_v41  ;;  %v512_v41 = vld [vmem:[%s2160_s10] sm:$0xf] }
 0x2dc   :  { %919 = vmatprep.subr.bf16.mxu1 %v1706_v42  ;;  %v528_v42 = vsub.s32 3, %v2016_v57 }
 0x2de   :  { %v529_v46 = vrot.slane %v512_v41, %v528_v42 }
 0x2df   :  { %920 = vmatpush1.bf16.msra.mxu1 %v1704_v43  ;;  %v517_v43 = vrot.slane %v512_v41, %v2019_v58 }
 0x2e0   :  { %921 = vmatprep.subr.bf16.mxu1 %v1712_v44  ;;  %v525_v44 = vrot.slane %v512_v41, %v524_v40 }
 0x2e3   :  { %922 = vmatpush1.bf16.msra.mxu1 %v1710_v45  ;;  %v521_v45 = vrot.slane %v512_v41, %v319_v60 }
 0x2e4   :  { %923 = vmatprep.subr.bf16.mxu1 %v1718_v47 }
 0x2e7   :  { %924 = vmatpush1.bf16.msra.mxu1 %v1716_v49 }
 0x2e8   :  { %925 = vmatprep.subr.bf16.mxu1 %v1724_v51 }
 0x2eb   :  { %926 = vmatpush1.bf16.msra.mxu1 %v1722_v53 }
 0x2ec   :  { %1531 = vmatprep.subr.bf16.mxu1 %v1726_v55 }
 0x381   :  { %v437_v63 = vpop.f32.mrb[4].mxu1 }
 0x382   :  { %v438_v0 = vadd.f32 %v437_v63, %v316_v61  ;;  %v439_v2 = vpop.f32.mrb[5].mxu1 }
 0x383   :  { %v440_v3 = vadd.f32 %v439_v2, %v320_v62  ;;  %v441_v4 = vpop.f32.mrb[6].mxu1 }
 0x384   :  { %v444_v5 = vmax.f32 %v438_v0, 0.0  ;;  %v442_v6 = vpop.f32.mrb[7].mxu1 }
 0x385   :  { %v445_v7 = vmax.f32 %v440_v3, 0.0 }
 0x386   :  { %v446_v11 = vpack.c.bf16 %v444_v5, %v444_v5  ;;  %v1290_v5 = vld [vmem:[#allocation2] sm:$0x1] }
 0x387   :  { %v447_v8 = vpack.c.bf16 %v445_v7, %v445_v7  ;;  %1293 = vperm.xlu0 %1596, %v1290_v5  }
 0x389   :  { %886 = vmatprep.mubr.bf16.mxu0 %v447_v8  ;;  %927 = vmatprep.mubr.bf16.mxu1 %v447_v8  ;;  %v1463_v8 = vld [vmem:[%s2162_s12] ss:$0 sm:$0xff]  ;;  %s1815_s12 = smov [#allocation6]  }
 0x38a   :  { %887 = vmatmul.mubr.bf16.vlgmr.msra.gmra.mrb[8].mxu0 %v446_v11  ;;  %928 = vmatmul.mubr.bf16.vlgmr.msra.gmra.mrb[8].mxu1 %v446_v11  ;;  %s1360_s22 = sshll.u32 %s1815_s12, 4  ;;  %s1361_s22 = int_to_ptr.vmem [resolvable:$true] %s1360_s22 }
 0x38b   :  { %1510 = vmatpush3.bf16.msra.mxu0 %v1727_v9  ;;  %1532 = vmatpush3.bf16.msra.mxu1 %v1728_v10  ;;  %s1787_s23 = scalar_lea.vmem %s1361_s22, 32  ;;  %p1788_p9 = scmp.lt.s32.totalorder %s1361_s22, %s1361_s22 }
 0x38c   :  { %1511 = vmatprep.subr.bf16.mxu0 %v1729_v12  ;;  %1533 = vmatprep.subr.bf16.mxu1 %v1730_v13 }
 0x38f   :  { %1512 = vmatpush3.bf16.msra.mxu0 %v1731_v14  ;;  %1534 = vmatpush3.bf16.msra.mxu1 %v1732_v15 }
 0x390   :  { %1513 = vmatprep.subr.bf16.mxu0 %v1733_v16  ;;  %1535 = vmatprep.subr.bf16.mxu1 %v1734_v17 }
 0x393   :  { %1514 = vmatpush3.bf16.msra.mxu0 %v1735_v18  ;;  %1536 = vmatpush3.bf16.msra.mxu1 %v1736_v19 }
 0x394   :  { %1515 = vmatprep.subr.bf16.mxu0 %v1737_v20  ;;  %1537 = vmatprep.subr.bf16.mxu1 %v1738_v21  ;;  %v1289_v21 = vld [vmem:[%s2163_s13] sm:$0x1]  ;;  %s1783_s13 = scalar_lea.vmem %s1361_s22, 16 }
 0x395   :  { %p1784_p8 = scmp.ne.s32.totalorder %s1361_s22, %s1783_s13  ;;  %p1789_p10 = scmp.lt.s32.totalorder %s1787_s23, %s1783_s13 }
 0x397   :  { %1516 = vmatpush3.bf16.msra.mxu0 %v1739_v22  ;;  %1538 = vmatpush3.bf16.msra.mxu1 %v1740_v23  ;;  %p1790_p11 = por %p1789_p10, %p1788_p9 }
 0x398   :  { %1517 = vmatprep.subr.bf16.mxu0 %v1741_v24  ;;  %1539 = vmatprep.subr.bf16.mxu1 %v1742_v25 }
 0x399   :  { %p1791_p12 = pnand %p1790_p11, %p1784_p8 }
 0x39b   :  { %1518 = vmatpush3.bf16.msra.mxu0 %v1743_v26  ;;  %1540 = vmatpush3.bf16.msra.mxu1 %v1744_v27 }
 0x39c   :  { %1519 = vmatprep.subr.bf16.mxu0 %v1745_v28  ;;  %1541 = vmatprep.subr.bf16.mxu1 %v1746_v29 }
 0x39f   :  { %1520 = vmatpush3.bf16.msra.mxu0 %v1747_v30  ;;  %1542 = vmatpush3.bf16.msra.mxu1 %v1748_v31 }
 0x3a0   :  { %1521 = vmatprep.subr.bf16.mxu0 %v1749_v32  ;;  %1543 = vmatprep.subr.bf16.mxu1 %v1750_v33 }
 0x3a3   :  { %1522 = vmatpush3.bf16.msra.mxu0 %v1751_v34  ;;  %1544 = vmatpush3.bf16.msra.mxu1 %v1752_v35 }
 0x3a4   :  { %1523 = vmatprep.subr.bf16.mxu0 %v1753_v36  ;;  %1545 = vmatprep.subr.bf16.mxu1 %v1754_v37 }
 0x3a7   :  { %1524 = vmatpush3.bf16.msra.mxu0 %v1755_v38  ;;  %1546 = vmatpush3.bf16.msra.mxu1 %v1756_v39 }
 0x3a8   :  { %1583 = vmatprep.subr.bf16.mxu0 %v1812_v1 }
 0x406   :  { %v1294_v22 = vpop.permute.xlu0 %1293 }
 0x407   :  { %v1299_v23 = vrot.slane %v1294_v22, %v2019_v58 }
 0x45d   :  { %v888_v47 = vpop.f32.mrb[8].mxu0  ;;  %v929_v48 = vpop.f32.mrb[8].mxu1 }
 0x45e   :  { %v889_v49 = vadd.f32 %v888_v47, %v517_v43  ;;  %v930_v50 = vadd.f32 %v929_v48, %v525_v44  ;;  %v890_v51 = vpop.f32.mrb[9].mxu0  ;;  %v931_v52 = vpop.f32.mrb[9].mxu1 }
 0x45f   :  { %v891_v53 = vadd.f32 %v890_v51, %v521_v45  ;;  %v932_v54 = vadd.f32 %v931_v52, %v529_v46  ;;  %v892_v55 = vpop.f32.mrb[10].mxu0  ;;  %v933_v56 = vpop.f32.mrb[10].mxu1 }
 0x460   :  { %v936_v59 = vmax.f32 %v889_v49, 0.0  ;;  %v938_v61 = vmax.f32 %v930_v50, 0.0  ;;  %v893_v62 = vpop.f32.mrb[11].mxu0  ;;  %v934_v63 = vpop.f32.mrb[11].mxu1 }
 0x461   :  { %v937_v0 = vmax.f32 %v891_v53, 0.0  ;;  %v939_v2 = vmax.f32 %v932_v54, 0.0 }
 0x462   :  { %v940_v60 = vpack.c.bf16 %v936_v59, %v936_v59  ;;  %v942_v4 = vpack.c.bf16 %v938_v61, %v938_v61 }
 0x463   :  { %v941_v3 = vpack.c.bf16 %v937_v0, %v937_v0  ;;  %v943_v57 = vpack.c.bf16 %v939_v2, %v939_v2 }
 0x465   :  { %1239 = vmatprep.mubr.bf16.mxu0 %v941_v3  ;;  %1279 = vmatprep.mubr.bf16.mxu1 %v943_v57 }
 0x466   :  { %1240 = vmatmul.mubr.bf16.vlgmr.msra.gmra.mrb[12].mxu0 %v940_v60  ;;  %1280 = vmatmul.mubr.bf16.vlgmr.msra.gmra.mrb[12].mxu1 %v942_v4 }
 0x467   :  { %1585 = vmatprep.mubr.msk.bf16.mxu0 %vm1813_vm0, %v1812_v1 }
 0x539   :  { %v1525_v6 = vpop.f32.mrb[12].mxu0  ;;  %v1547_v7 = vpop.f32.mrb[12].mxu1 }
 0x53a   :  { %v1526_v9 = vpop.f32.mrb[13].mxu0  ;;  %v1548_v10 = vpop.f32.mrb[13].mxu1 }
 0x53b   :  { %v1527_v11 = vadd.f32 %v1526_v9, %v1525_v6  ;;  %v1549_v12 = vadd.f32 %v1548_v10, %v1547_v7  ;;  %v1528_v13 = vpop.f32.mrb[14].mxu0  ;;  %v1550_v14 = vpop.f32.mrb[14].mxu1 }
 0x53c   :  { %v1529_v15 = vpop.f32.mrb[15].mxu0  ;;  %v1551_v16 = vpop.f32.mrb[15].mxu1 }
 0x53d   :  { %v1242_v17 = vadd.f32 %v1527_v11, %v1463_v8 }
 0x53f   :  { %v1282_v18 = vadd.f32 %v1549_v12, %v1242_v17 }
 0x541   :  { %v1287_v19 = vmax.f32 %v1282_v18, 0.0 }
 0x543   :  { %v1288_v1 = vpack.c.bf16 %v1287_v19, %v1287_v19 }
 0x545   :  { %v1304_v20 = vsel %vm249_vm4, %v1288_v1, 0 }
 0x546   :  { %1584 = vmatpush3.bf16.xpose.msra.mxu0 %v1304_v20 }
 0x54d   :  { %1586 = vmatmul.mubr.msk.bf16.vlgmr.msra.gmra.mrb[16].mxu0 %vm249_vm4, %v1289_v21 }
 0x620   :  { %v1340_v24 = vpop.f32.mrb[16].mxu0 }
 0x621   :  { %v1341_v25 = vadd.f32 %v1340_v24, %v1299_v23  ;;  %v1587_v26 = vpop.f32.mrb[17].mxu0 }
 0x622   :  { %v1343_v27 = vpop.f32.mrb[18].mxu0 }
 0x623   :  { %v1497_v28 = vmul.f32 -1.442695, %v1341_v25  ;;  %v1588_v29 = vpop.f32.mrb[19].mxu0 }
 0x625   :  { %1757 = vpow2.f32 %v1497_v28 }
 0x62f   :  { %v1758_v30 = vpop.eup %1757 }
 0x630   :  { %v1349_v31 = vadd.f32 1.0, %v1758_v30 }
 0x632   :  { %1759 = vrcp.f32 %v1349_v31 }
 0x63c   :  { %v1760_v32 = vpop.eup %1759 }
 0x63d   :  { %1353 = vst.msk [vmem:[#allocation6] sm:$0x1] %vm1352_vm5, %v1760_v32 }
 0x63e   :  { %1794 = shalt.err (!%p1791_p12)
}
 0x63f   :  { %s1795_s1 = scalar_lea.hbm %s2165_s15, 16 }
 0x640   :  { %p1796_p13 = scmp.ne.s32.totalorder %s2165_s15, %s1795_s1  ;;  %p1799_p0 = scmp.lt.u32.totalorder %s1795_s1, %s2165_s15 }
 0x642   :  { %p1801_p1 = pnand %p1799_p0, %p1796_p13 }
 0x644   :  { %1804 = shalt.err (!%p1801_p1)
}
 0x645   :  { %1363 = dma.vmem_to_hbm [thread:$0]  %s1361_s22, 16, %s2165_s15, [#allocation5]  }
 0x646   :  { %1807 = dma.done.wait [#allocation5], 16  }
 0x647   :  { %1808 = vsyncadd [#allocation5], 4294967280 }
 0x648   :  { %1367 = vsyncpa [#allocation4], 1 }
 0x649   :  { %1368 = vsyncpa [#allocation5], 1 }

</bundles_post_ra>
